<compile_context>
chip_gen: v7x
topology: tpu7x:2x2x1
jax: 0.10.0
libtpu: 0.0.40
codegen_flags: <defaults>
</compile_context>

<pallas_src>
import functools

import jax
import jax.numpy as jnp
from jax.experimental import pallas as pl
from jax.experimental.pallas import tpu as pltpu


# ----------------------------- helpers --------------------------------------

def _round_up(x, m):
    return ((x + m - 1) // m) * m


# ---------------- fused matmul + BN (+ReLU / +residual) kernels ---------------

def _mm_bn_kernel(a_ref, b_ref, s_ref, t_ref, o_ref, *, relu):
    acc = jnp.dot(a_ref[...], b_ref[...], preferred_element_type=jnp.float32)
    y = acc * s_ref[...] + t_ref[...]          # folded BN (inference)
    if relu:
        y = jnp.maximum(y, 0.0)
    o_ref[...] = y.astype(o_ref.dtype)


def _mm_bn_res_kernel(a_ref, b_ref, s_ref, t_ref, r_ref, o_ref):
    acc = jnp.dot(a_ref[...], b_ref[...], preferred_element_type=jnp.float32)
    y = acc * s_ref[...] + t_ref[...] + r_ref[...].astype(jnp.float32)
    o_ref[...] = jnp.maximum(y, 0.0).astype(o_ref.dtype)


def matmul_bn(a, b, scale, shift, *, relu, residual=None):
    """(M,K)bf16 @ (K,N)bf16 -> bf16 with per-column scale/shift epilogue.

    Whole (K, N) weight kept VMEM-resident (single K/N block) so the
    activation matrix streams through HBM once; BN, optional ReLU and the
    optional residual add+ReLU ride the epilogue on free VPU slots.
    """
    M, K = a.shape
    K2, N = b.shape
    assert K == K2, (K, K2)

    if M >= 512:
        tm = 256
    elif M >= 128:
        tm = 128
    else:
        tm = _round_up(max(M, 8), 8)
    Mp = _round_up(M, tm)

    a_p = jnp.pad(a, ((0, Mp - M), (0, 0))) if Mp != M else a
    operands = [a_p, b, scale, shift]
    in_specs = [
        pl.BlockSpec((tm, K), lambda i: (i, 0)),
        pl.BlockSpec((K, N), lambda i: (0, 0)),     # weight: VMEM-resident
        pl.BlockSpec((1, N), lambda i: (0, 0)),
        pl.BlockSpec((1, N), lambda i: (0, 0)),
    ]
    if residual is not None:
        r_p = jnp.pad(residual, ((0, Mp - M), (0, 0))) if Mp != M else residual
        operands.append(r_p)
        in_specs.append(pl.BlockSpec((tm, N), lambda i: (i, 0)))
        kernel = _mm_bn_res_kernel
    else:
        kernel = functools.partial(_mm_bn_kernel, relu=relu)

    out = pl.pallas_call(
        kernel,
        out_shape=jax.ShapeDtypeStruct((Mp, N), jnp.bfloat16),
        grid_spec=pltpu.PrefetchScalarGridSpec(
            num_scalar_prefetch=0,
            grid=(Mp // tm,),
            in_specs=in_specs,
            out_specs=pl.BlockSpec((tm, N), lambda i: (i, 0)),
        ),
        compiler_params=pltpu.CompilerParams(
            dimension_semantics=("parallel",),
            vmem_limit_bytes=32 * 1024 * 1024),
    )(*operands)
    return out[:M] if Mp != M else out


# ------------------------- conv = (im2col) + matmul ---------------------------

def _im2col(x, kh, kw, stride, pad):
    # TODO(synk): 3x3/7x7 patch extraction still materializes in XLA (bf16);
    # a tap-axis direct conv needs element-offset BlockSpecs not used here.
    B, H, W, C = x.shape
    xp = jnp.pad(x, ((0, 0), (pad, pad), (pad, pad), (0, 0)))
    Ho = (H + 2 * pad - kh) // stride + 1
    Wo = (W + 2 * pad - kw) // stride + 1
    cols = []
    for i in range(kh):
        for j in range(kw):
            cols.append(xp[:, i:i + stride * (Ho - 1) + 1:stride,
                             j:j + stride * (Wo - 1) + 1:stride, :])
    cols = jnp.concatenate(cols, axis=-1)          # (B, Ho, Wo, kh*kw*C) bf16
    return cols.reshape(B * Ho * Wo, kh * kw * C), Ho, Wo


@functools.partial(jax.jit,
                   static_argnames=("kh", "kw", "stride", "pad", "relu", "kp"))
def conv_bn_act(x, w2d, scale, shift, residual=None, *,
                kh, kw, stride, pad, relu, kp):
    """NHWC bf16 conv + folded BN + optional ReLU (+ fused residual add+ReLU)."""
    B = x.shape[0]
    cout = w2d.shape[1]
    if kh == 1 and kw == 1:
        if stride > 1:                       # 1x1 conv: no im2col needed
            x = x[:, ::stride, ::stride, :]
        Ho, Wo = x.shape[1], x.shape[2]
        a = x.reshape(B * Ho * Wo, x.shape[3])
    else:
        a, Ho, Wo = _im2col(x, kh, kw, stride, pad)
    if a.shape[1] != kp:                     # K padded to weight's pre-padded K
        a = jnp.pad(a, ((0, 0), (0, kp - a.shape[1])))
    res2d = (residual.reshape(B * Ho * Wo, cout)
             if residual is not None else None)
    y = matmul_bn(a, w2d, scale, shift, relu=relu, residual=res2d)
    return y.reshape(B, Ho, Wo, cout)


# ----------------------------- pooling ops ------------------------------------

@jax.jit
def maxpool3x3_s2(x):
    # TODO(synk): kept as an XLA-fused jnp.maximum tree (memory-bound, used
    # once); overlapping 3x3/stride-2 windows are not rectangular BlockSpecs.
    B, H, W, C = x.shape
    pad, stride, k = 1, 2, 3
    Ho = (H + 2 * pad - k) // stride + 1
    Wo = (W + 2 * pad - k) // stride + 1
    xp = jnp.pad(x, ((0, 0), (pad, pad), (pad, pad), (0, 0)),
                 constant_values=-jnp.inf)
    out = None
    for i in range(k):
        for j in range(k):
            s = xp[:, i:i + stride * (Ho - 1) + 1:stride,
                     j:j + stride * (Wo - 1) + 1:stride, :]
            out = s if out is None else jnp.maximum(out, s)
    return out


def _avgpool_kernel(x_ref, o_ref):
    o_ref[...] = jnp.mean(x_ref[...].astype(jnp.float32), axis=1)


@jax.jit
def global_avgpool(x):
    B, H, W, C = x.shape
    xr = x.reshape(B, H * W, C)
    return pl.pallas_call(
        _avgpool_kernel,
        out_shape=jax.ShapeDtypeStruct((B, C), jnp.float32),
        grid=(1,),
        in_specs=[pl.BlockSpec((B, H * W, C), lambda i: (0, 0, 0))],
        out_specs=pl.BlockSpec((B, C), lambda i: (0, 0)),
    )(xr)


# ------------------------- ResNet-152 parameters ------------------------------
# TODO(synk): pretrained ImageNet weights cannot be loaded here; parameters are
# deterministic synthetic He-init weights with folded (inference-mode) BN.

def _conv_bn_params(key, kh, kw, cin, cout, gamma):
    std = (2.0 / (kh * kw * cin)) ** 0.5
    w = jax.random.normal(key, (kh, kw, cin, cout), jnp.float32) * std
    K = kh * kw * cin
    Kp = _round_up(K, 128)
    w2d = w.reshape(K, cout)
    if Kp != K:
        w2d = jnp.pad(w2d, ((0, Kp - K), (0, 0)))
    return dict(
        w=w2d.astype(jnp.bfloat16),                       # pre-padded, bf16
        scale=jnp.full((1, cout), gamma, jnp.float32),
        shift=jnp.zeros((1, cout), jnp.float32),
        kh=kh, kw=kw, kp=Kp,
    )


def make_params(key):
    cnt = [0]

    def nk():
        cnt[0] += 1
        return jax.random.fold_in(key, cnt[0])

    params = {"stem": _conv_bn_params(nk(), 7, 7, 3, 64, 1.0)}
    layers_cfg = [(3, 64), (8, 128), (36, 256), (3, 512)]   # ResNet-152
    expansion = 4
    inplanes = 64
    layers = []
    for li, (nblocks, planes) in enumerate(layers_cfg):
        blocks = []
        for bi in range(nblocks):
            stride = 2 if (li > 0 and bi == 0) else 1
            block = dict(
                conv1=_conv_bn_params(nk(), 1, 1, inplanes, planes, 1.0),
                conv2=_conv_bn_params(nk(), 3, 3, planes, planes, 1.0),
                conv3=_conv_bn_params(nk(), 1, 1, planes, planes * expansion, 0.1),
                stride=stride,
            )
            if stride != 1 or inplanes != planes * expansion:
                block["downsample"] = _conv_bn_params(
                    nk(), 1, 1, inplanes, planes * expansion, 1.0)
            blocks.append(block)
            inplanes = planes * expansion
        layers.append(blocks)
    params["layers"] = layers
    return params


# ------------------------------ forward pass ----------------------------------

def geo_embedding_forward(params, x_nchw):
    # NCHW (PyTorch) -> NHWC, bf16 activations end-to-end
    x = jnp.transpose(x_nchw, (0, 2, 3, 1)).astype(jnp.bfloat16)

    p = params["stem"]
    x = conv_bn_act(x, p["w"], p["scale"], p["shift"],
                    kh=7, kw=7, stride=2, pad=3, relu=True, kp=p["kp"])
    x = maxpool3x3_s2(x)

    for blocks in params["layers"]:
        for block in blocks:
            identity = x
            s = block["stride"]
            p1, p2, p3 = block["conv1"], block["conv2"], block["conv3"]
            out = conv_bn_act(x, p1["w"], p1["scale"], p1["shift"],
                              kh=1, kw=1, stride=1, pad=0, relu=True,
                              kp=p1["kp"])
            out = conv_bn_act(out, p2["w"], p2["scale"], p2["shift"],
                              kh=3, kw=3, stride=s, pad=1, relu=True,
                              kp=p2["kp"])
            if "downsample" in block:
                pd = block["downsample"]
                identity = conv_bn_act(x, pd["w"], pd["scale"], pd["shift"],
                                       kh=1, kw=1, stride=s, pad=0, relu=False,
                                       kp=pd["kp"])
            # conv3 + BN + residual add + ReLU fused into one matmul epilogue
            x = conv_bn_act(out, p3["w"], p3["scale"], p3["shift"], identity,
                            kh=1, kw=1, stride=1, pad=0, relu=True,
                            kp=p3["kp"])

    feat = global_avgpool(x)                 # AdaptiveAvgPool2d(1), f32
    return feat.reshape(feat.shape[0], -1)   # .view(B, -1) -> (B, 2048)


# --------------------------------- main ----------------------------------------

if __name__ == "__main__":
    key = jax.random.PRNGKey(0)
    params = make_params(jax.random.fold_in(key, 1))
    # small image, 3 channels as the ResNet stem requires
    x = jax.random.normal(jax.random.fold_in(key, 2), (2, 3, 32, 32), jnp.float32)

    out = geo_embedding_forward(params, x)
    out = jax.block_until_ready(out)

    assert out.shape == (2, 2048), out.shape
    assert bool(jnp.all(jnp.isfinite(out)))
    print("KERNEL_OK")
</pallas_src>

<mosaic_0001>
module attributes {stable_mosaic.version = 11 : i64} {
  func.func @_mm_bn_kernel(%arg0: i32, %arg1: memref<256x256xbf16, #tpu.memory_space<vmem>>, %arg2: memref<256x64xbf16, #tpu.memory_space<vmem>>, %arg3: memref<1x64xf32, #tpu.memory_space<vmem>>, %arg4: memref<1x64xf32, #tpu.memory_space<vmem>>, %arg5: memref<256x64xbf16, #tpu.memory_space<vmem>>) attributes {dimension_semantics = [#tpu.dimension_semantics<parallel>], iteration_bounds = array<i64: 2>, scalar_prefetch = 0 : i64, scratch_operands = 0 : i64, tpu.core_type = #tpu.core_type<tc>, window_params = [{transform_indices = @transform_0, window_bounds = array<i64: 256, 256>}, {pipeline_mode = #tpu.pipeline_mode<synchronous>, transform_indices = @transform_1, window_bounds = array<i64: 256, 64>}, {pipeline_mode = #tpu.pipeline_mode<synchronous>, transform_indices = @transform_2, window_bounds = array<i64: 1, 64>}, {pipeline_mode = #tpu.pipeline_mode<synchronous>, transform_indices = @transform_3, window_bounds = array<i64: 1, 64>}, {transform_indices = @transform_4, window_bounds = array<i64: 256, 64>}]} {
    %c0 = arith.constant 0 : index
    %c0_0 = arith.constant 0 : index
    %0 = vector.load %arg1[%c0, %c0_0] : memref<256x256xbf16, #tpu.memory_space<vmem>>, vector<256x256xbf16>
    %c0_1 = arith.constant 0 : index
    %c0_2 = arith.constant 0 : index
    %1 = vector.load %arg2[%c0_1, %c0_2] : memref<256x64xbf16, #tpu.memory_space<vmem>>, vector<256x64xbf16>
    %cst = arith.constant dense<0.000000e+00> : vector<256x64xf32>
    %2 = tpu.matmul %0, %1, %cst {dimension_numbers = #tpu.dot_dimension_numbers<[1], [0], [0], [1], [0, 0, 1, 1], [], []>} : vector<256x256xbf16>, vector<256x64xbf16>, vector<256x64xf32> -> vector<256x64xf32>
    %c0_3 = arith.constant 0 : index
    %c0_4 = arith.constant 0 : index
    %3 = vector.load %arg3[%c0_3, %c0_4] : memref<1x64xf32, #tpu.memory_space<vmem>>, vector<1x64xf32>
    %4 = vector.broadcast %3 : vector<1x64xf32> to vector<256x64xf32>
    %5 = arith.mulf %2, %4 : vector<256x64xf32>
    %c0_5 = arith.constant 0 : index
    %c0_6 = arith.constant 0 : index
    %6 = vector.load %arg4[%c0_5, %c0_6] : memref<1x64xf32, #tpu.memory_space<vmem>>, vector<1x64xf32>
    %7 = vector.broadcast %6 : vector<1x64xf32> to vector<256x64xf32>
    %8 = arith.addf %5, %7 : vector<256x64xf32>
    %cst_7 = arith.constant 0.000000e+00 : f32
    %9 = vector.broadcast %cst_7 : f32 to vector<256x64xf32>
    %10 = arith.maximumf %8, %9 : vector<256x64xf32>
    %11 = arith.truncf %10 : vector<256x64xf32> to vector<256x64xbf16>
    %c0_8 = arith.constant 0 : index
    %c0_9 = arith.constant 0 : index
    %12 = vector.load %arg5[%c0_8, %c0_9] : memref<256x64xbf16, #tpu.memory_space<vmem>>, vector<256x64xbf16>
    tpu.vector_store %arg5[%c0_8, %c0_9], %11 {strides = array<i32>} : memref<256x64xbf16, #tpu.memory_space<vmem>>, vector<256x64xbf16>,
    return
  }
  func.func @transform_0(%arg0: i32) -> (i32, i32) {
    %c0_i32 = arith.constant 0 : i32
    %c0_i32_0 = arith.constant 0 : i32
    return %arg0, %c0_i32 : i32, i32
  }
  func.func @transform_1(%arg0: i32) -> (i32, i32) {
    %c0_i32 = arith.constant 0 : i32
    %c0_i32_0 = arith.constant 0 : i32
    %c0_i32_1 = arith.constant 0 : i32
    return %c0_i32, %c0_i32_0 : i32, i32
  }
  func.func @transform_2(%arg0: i32) -> (i32, i32) {
    %c0_i32 = arith.constant 0 : i32
    %c0_i32_0 = arith.constant 0 : i32
    %c0_i32_1 = arith.constant 0 : i32
    return %c0_i32, %c0_i32_0 : i32, i32
  }
  func.func @transform_3(%arg0: i32) -> (i32, i32) {
    %c0_i32 = arith.constant 0 : i32
    %c0_i32_0 = arith.constant 0 : i32
    %c0_i32_1 = arith.constant 0 : i32
    return %c0_i32, %c0_i32_0 : i32, i32
  }
  func.func @transform_4(%arg0: i32) -> (i32, i32) {
    %c0_i32 = arith.constant 0 : i32
    %c0_i32_0 = arith.constant 0 : i32
    return %arg0, %c0_i32 : i32, i32
  }
}

</mosaic_0001>

<bundles_post_ra>
// kernel: conv_bn_act.1
= control target key start
LH: loop header
LB: loop body
LE: loop exit
PB: predicated region body
PF: predicated region fallthrough
CT: control target
= control target key end

     0   :  { %9 = vsyncpa [#allocation3], 0  ;;  %s1814_s0 = inlined_call_operand.vmem [shape: bf16[512,256], index: 0, kind: input, shape index: {}]   ;;  %s1815_s1 = inlined_call_operand.vmem [shape: bf16[256,64], index: 1, kind: input, shape index: {}]   ;;  %s1816_s2 = inlined_call_operand.vmem [shape: f32[1,64], index: 2, kind: input, shape index: {}]   ;;  %s1817_s3 = inlined_call_operand.vmem [shape: f32[1,64], index: 3, kind: input, shape index: {}]   ;;  %s1818_s4 = inlined_call_operand.hbm [shape: bf16[512,64], index: 4, kind: output, shape index: {}]  }
   0x1   :  { %11 = vsyncpa [#allocation3 + $0x1], 0  ;;  %s1485_s15 = smov 0   ;;  %s1487_s16 = smov 0  }
   0x2   :  { %s1489_s17 = smov 0   ;;  %s1491_s18 = smov 0  }
   0x3 LB: > { %s1506_s19 = sadd.s32 4294967295, %s1455_s18   ;;  %s1031_s20 = sadd.s32 4294967294, %s1455_s18   ;;  %s1455_s18 = sphi %s1491_s18, %s1824_s18   ;;  %s1451_s17 = sphi %s1489_s17, %s1823_s17   ;;  %s1447_s16 = sphi %s1487_s16, %s1822_s16   ;;  %s1443_s15 = sphi %s1485_s15, %s1821_s15  }
   0x4   : > { %s1510_s21 = sadd.s32 1, %s1455_s18   ;;  %s113_s22 = sadd.s32 1, %s1451_s17 }
   0x5   : > { %s110_s23 = ssub.s32 %s1455_s18, %s1510_s21  ;;  %p123_p0 = scmp.ne.s32.totalorder %s1451_s17, %s1447_s16 }
   0x6   : > { %p111_p1 = scmp.eq.s32.totalorder %s110_s23, 0  ;;  %p124_p2 = scmp.eq.s32.totalorder %s1506_s19, 1 }
   0x7   : > { %p129_p3 = scmp.ne.s32.totalorder %s1447_s16, %s1443_s15  ;;  %p130_p4 = scmp.eq.s32.totalorder %s1031_s20, 1 }
   0x8   : > { %s1521_s24 = scalar_select %p111_p1, %s1451_s17, %s113_s22  }
   0x9   : > { %p1523_p5 = por %p124_p2, %p123_p0  ;;  %p1527_p6 = por %p130_p4, %p129_p3 }
   0xa   : > { %p1034_p7 = scmp.ge.s32.totalorder %s1455_s18, 1  ;;  %p167_p8 = scmp.lt.s32.totalorder %s1455_s18, 3 }
   0xc   : > { %p168_p9 = pnand %p1034_p7, %p167_p8 }
   0xd   : > { %v1329_v0 = vld [vmem:[%s1815_s1 + $0x40] sm:$0xff] (!%p168_p9)   ;;  %s1036_s29 = sshll.u32 (!%p168_p9), %s1506_s19, 5  ;;  %v1331_v2 = vld [vmem:[%s1815_s1 + $0x48] sm:$0xff] (!%p168_p9)   ;;  %v1333_v4 = vld [vmem:[%s1815_s1 + $0x50] sm:$0xff] (!%p168_p9)   ;;  %s191_s8 = sand.u32 (!%p168_p9), 1, %s1447_s16   ;;  %vm922_vm0 = vcmask (!%p168_p9), 519168  }
   0xe   : > { %171 = sbr.rel (%p168_p9) target bundleno = 342 (0x156), region = 36  ;;  %v1330_v1 = vld [vmem:[%s1815_s1] sm:$0xff] (!%p168_p9)   ;;  %1160 = vmatprep.subr.bf16.mxu0 (!%p168_p9), %v1329_v0  ;;  %1272 = vmatprep.subr.bf16.mxu1 (!%p168_p9), %v1329_v0  ;;  %v1332_v3 = vld [vmem:[%s1815_s1 + $0x8] sm:$0xff] (!%p168_p9)   ;;  %p195_p10 = scmp.lt.s32.totalorder (!%p168_p9), %s1036_s29, 63  ;;  %v1334_v5 = vld [vmem:[%s1815_s1 + $0x10] sm:$0xff] (!%p168_p9)  }
   0xf   : > { %1161 = vmatpush3.bf16.msra.mxu0 (!%p168_p9), %v1330_v1  ;;  %1280 = vmatpush3.bf16.msra.mxu1 (!%p168_p9), %v1330_v1  ;;  %v1335_v6 = vld [vmem:[%s1815_s1 + $0x58] sm:$0xff] (!%p168_p9)   ;;  %v1337_v8 = vld [vmem:[%s1815_s1 + $0x60] sm:$0xff] (!%p168_p9)   ;;  %v1339_v10 = vld [vmem:[%s1815_s1 + $0x68] sm:$0xff] (!%p168_p9)   ;;  %s1159_s11 = sshll.u32 (!%p168_p9), %s1506_s19, 11  ;;  %s1773_s19 = scalar_lea.sflag (!%p168_p9), [#allocation3], %s191_s8 }
  0x10   : > { %1162 = vmatprep.subr.bf16.mxu0 (!%p168_p9), %v1331_v2  ;;  %1273 = vmatprep.subr.bf16.mxu1 (!%p168_p9), %v1331_v2  ;;  %v1336_v7 = vld [vmem:[%s1815_s1 + $0x18] sm:$0xff] (!%p168_p9)   ;;  %v1338_v9 = vld [vmem:[%s1815_s1 + $0x20] sm:$0xff] (!%p168_p9)   ;;  %v1340_v13 = vld [vmem:[%s1815_s1 + $0x28] sm:$0xff] (!%p168_p9)   ;;  %s1759_s20 = scalar_lea.hbm (!%p168_p9), %s1818_s4, %s1159_s11  ;;  %s1457_s23 = smov (!%p168_p9), [#allocation2]  }
  0x11   : > { %v1341_v14 = vld [vmem:[%s1815_s1 + $0x70] sm:$0xff] (!%p168_p9)   ;;  %v1343_v16 = vld [vmem:[%s1815_s1 + $0x78] sm:$0xff] (!%p168_p9)   ;;  %v1622_v51 = vld [vmem:[%s1816_s2] ss:$0 sm:$0xff] (!%p168_p9) }
  0x12   : > { %v1342_v15 = vld [vmem:[%s1815_s1 + $0x30] sm:$0xff] (!%p168_p9)   ;;  %v1344_v17 = vld [vmem:[%s1815_s1 + $0x38] sm:$0xff] (!%p168_p9)   ;;  %v1628_v57 = vld [vmem:[%s1817_s3] ss:$0 sm:$0xff] (!%p168_p9) }
  0x13   : > { %1163 = vmatpush3.bf16.msra.mxu0 (!%p168_p9), %v1332_v3  ;;  %1281 = vmatpush3.bf16.msra.mxu1 (!%p168_p9), %v1332_v3 }
  0x14   : > { %1164 = vmatprep.subr.bf16.mxu0 (!%p168_p9), %v1333_v4  ;;  %1274 = vmatprep.subr.bf16.mxu1 (!%p168_p9), %v1333_v4 }
  0x15   : > { %s1826_s29 = smov (!%p195_p10, %s1036_s29), 63 }
  0x16   : > { %s1126_s27 = sshll.u32 %s1826_s29, 3 }
  0x17   : > { %1165 = vmatpush3.bf16.msra.mxu0 %v1334_v5  ;;  %1282 = vmatpush3.bf16.msra.mxu1 %v1334_v5  ;;  %s1564_s7 = scalar_lea.vmem %s1814_s0, %s1126_s27  ;;  %s1397_s27 = sshll.u32 %s1457_s23, 4  ;;  %s1398_s27 = int_to_ptr.vmem [resolvable:$false] %s1397_s27 }
  0x18   : > { %1166 = vmatprep.subr.bf16.mxu0 %v1335_v6  ;;  %1275 = vmatprep.subr.bf16.mxu1 %v1335_v6  ;;  %v1347_v11 = vld [vmem:[%s1564_s7 + $0x4] ss:$8 sps:$4 sm:$0xff]   ;;  %v1345_v18 = vld [vmem:[%s1564_s7] ss:$8 sps:$4 sm:$0xff]   ;;  %v1351_v20 = vld [vmem:[%s1564_s7 + $0x14] ss:$8 sps:$4 sm:$0xff]  }
  0x19   : > { %v1350_v12 = vld [vmem:[%s1564_s7 + $0x84] ss:$8 sps:$4 sm:$0xff]   ;;  %555 = vmatprep.mubr.bf16.mxu0 %v1347_v11  ;;  %v1348_v19 = vld [vmem:[%s1564_s7 + $0x80] ss:$8 sps:$4 sm:$0xff]   ;;  %v1353_v21 = vld [vmem:[%s1564_s7 + $0x94] ss:$8 sps:$4 sm:$0xff]  }
  0x1a   : > { %619 = vmatprep.mubr.bf16.mxu1 %v1350_v12  ;;  %v1355_v22 = vld [vmem:[%s1564_s7 + $0x10] ss:$8 sps:$4 sm:$0xff]   ;;  %v1357_v24 = vld [vmem:[%s1564_s7 + $0x24] ss:$8 sps:$4 sm:$0xff]   ;;  %v1361_v26 = vld [vmem:[%s1564_s7 + $0x20] ss:$8 sps:$4 sm:$0xff]  }
  0x1b   : > { %1167 = vmatpush3.bf16.msra.mxu0 %v1336_v7  ;;  %1283 = vmatpush3.bf16.msra.mxu1 %v1336_v7  ;;  %v1356_v23 = vld [vmem:[%s1564_s7 + $0x90] ss:$8 sps:$4 sm:$0xff]   ;;  %v1359_v25 = vld [vmem:[%s1564_s7 + $0xa4] ss:$8 sps:$4 sm:$0xff]   ;;  %v1362_v27 = vld [vmem:[%s1564_s7 + $0xa0] ss:$8 sps:$4 sm:$0xff]  }
  0x1c   : > { %1168 = vmatprep.subr.bf16.mxu0 %v1337_v8  ;;  %1276 = vmatprep.subr.bf16.mxu1 %v1337_v8  ;;  %v1363_v28 = vld [vmem:[%s1564_s7 + $0x34] ss:$8 sps:$4 sm:$0xff]   ;;  %v1367_v30 = vld [vmem:[%s1564_s7 + $0x30] ss:$8 sps:$4 sm:$0xff]   ;;  %v1369_v32 = vld [vmem:[%s1564_s7 + $0x44] ss:$8 sps:$4 sm:$0xff]  }
  0x1d   : > { %v1365_v29 = vld [vmem:[%s1564_s7 + $0xb4] ss:$8 sps:$4 sm:$0xff]   ;;  %v1368_v31 = vld [vmem:[%s1564_s7 + $0xb0] ss:$8 sps:$4 sm:$0xff]   ;;  %v1371_v33 = vld [vmem:[%s1564_s7 + $0xc4] ss:$8 sps:$4 sm:$0xff]  }
  0x1e   : > { %v1373_v34 = vld [vmem:[%s1564_s7 + $0x40] ss:$8 sps:$4 sm:$0xff]   ;;  %v1375_v36 = vld [vmem:[%s1564_s7 + $0x54] ss:$8 sps:$4 sm:$0xff]   ;;  %v1379_v38 = vld [vmem:[%s1564_s7 + $0x50] ss:$8 sps:$4 sm:$0xff]  }
  0x1f   : > { %1169 = vmatpush3.bf16.msra.mxu0 %v1338_v9  ;;  %1284 = vmatpush3.bf16.msra.mxu1 %v1338_v9  ;;  %v1374_v35 = vld [vmem:[%s1564_s7 + $0xc0] ss:$8 sps:$4 sm:$0xff]   ;;  %v1377_v37 = vld [vmem:[%s1564_s7 + $0xd4] ss:$8 sps:$4 sm:$0xff]   ;;  %v1380_v39 = vld [vmem:[%s1564_s7 + $0xd0] ss:$8 sps:$4 sm:$0xff]  }
  0x20   : > { %1170 = vmatprep.subr.bf16.mxu0 %v1339_v10  ;;  %1277 = vmatprep.subr.bf16.mxu1 %v1339_v10  ;;  %v1381_v40 = vld [vmem:[%s1564_s7 + $0x64] ss:$8 sps:$4 sm:$0xff]   ;;  %v1385_v42 = vld [vmem:[%s1564_s7 + $0x60] ss:$8 sps:$4 sm:$0xff]   ;;  %v1387_v44 = vld [vmem:[%s1564_s7 + $0x74] ss:$8 sps:$4 sm:$0xff]  }
  0x21   : > { %v1383_v41 = vld [vmem:[%s1564_s7 + $0xe4] ss:$8 sps:$4 sm:$0xff]   ;;  %v1386_v43 = vld [vmem:[%s1564_s7 + $0xe0] ss:$8 sps:$4 sm:$0xff]   ;;  %v1389_v45 = vld [vmem:[%s1564_s7 + $0xf4] ss:$8 sps:$4 sm:$0xff]  }
  0x22   : > { %v1391_v46 = vld [vmem:[%s1564_s7 + $0x70] ss:$8 sps:$4 sm:$0xff]   ;;  %s1399_s28 = scalar_lea.vmem %s1398_s27, 4096 }
  0x23   : > { %1171 = vmatpush3.bf16.msra.mxu0 %v1340_v13  ;;  %1285 = vmatpush3.bf16.msra.mxu1 %v1340_v13  ;;  %v1392_v47 = vld [vmem:[%s1564_s7 + $0xf0] ss:$8 sps:$4 sm:$0xff]   ;;  %s1035_s7 = sshll.u32 %s191_s8, 7 }
  0x24   : > { %1172 = vmatprep.subr.bf16.mxu0 %v1341_v14  ;;  %1278 = vmatprep.subr.bf16.mxu1 %v1341_v14  ;;  %s1640_s10 = scalar_lea.vmem [#allocation2], %s1035_s7 }
  0x25   : > { %s969_s12 = sshll.u32 %s1640_s10, 4  ;;  %s1761_s12 = int_to_ptr.vmem [resolvable:$true] %s969_s12 }
  0x26   : > { %s1393_s22 = scalar_lea.vmem %s1761_s12, 2048  ;;  %p1400_p0 = scmp.lt.s32.totalorder %s1761_s12, %s1398_s27 }
  0x27   : > { %1173 = vmatpush3.bf16.msra.mxu0 %v1342_v15  ;;  %1286 = vmatpush3.bf16.msra.mxu1 %v1342_v15  ;;  %p1394_p11 = scmp.ne.s32.totalorder %s1761_s12, %s1393_s22  ;;  %p1401_p1 = scmp.lt.s32.totalorder %s1399_s28, %s1393_s22 }
  0x28   : > { %1174 = vmatprep.subr.bf16.mxu0 %v1343_v16  ;;  %1279 = vmatprep.subr.bf16.mxu1 %v1343_v16 }
  0x29   : > { %p1395_p12 = pnand %p1394_p11, %p1523_p5  ;;  %p1402_p2 = por %p1401_p1, %p1400_p0 }
  0x2b   : > { %1175 = vmatpush3.bf16.msra.mxu0 %v1344_v17  ;;  %1287 = vmatpush3.bf16.msra.mxu1 %v1344_v17  ;;  %p1396_p13 = pneg %p1395_p12 }
  0x2d   : > { %p1403_p3 = pnand %p1402_p2, %p1396_p13 }
  0x2e   : > { %556 = vmatmul.mubr.bf16.vlgmr.msra.gmra.mrb[0].mxu0 %v1345_v18  ;;  %620 = vmatmul.mubr.bf16.vlgmr.msra.gmra.mrb[0].mxu1 %v1348_v19 }
  0x2f   : > { %563 = vmatprep.mubr.bf16.mxu0 %v1351_v20  ;;  %627 = vmatprep.mubr.bf16.mxu1 %v1353_v21 }
  0x36   : > { %564 = vmatmul.mubr.bf16.gmra.mrb[4].mxu0 %v1355_v22  ;;  %628 = vmatmul.mubr.bf16.gmra.mrb[4].mxu1 %v1356_v23 }
  0x37   : > { %571 = vmatprep.mubr.bf16.mxu0 %v1357_v24  ;;  %635 = vmatprep.mubr.bf16.mxu1 %v1359_v25 }
  0x3e   : > { %572 = vmatmul.mubr.bf16.gmra.mrb[8].mxu0 %v1361_v26  ;;  %636 = vmatmul.mubr.bf16.gmra.mrb[8].mxu1 %v1362_v27 }
  0x3f   : > { %579 = vmatprep.mubr.bf16.mxu0 %v1363_v28  ;;  %643 = vmatprep.mubr.bf16.mxu1 %v1365_v29 }
  0x46   : > { %580 = vmatmul.mubr.bf16.gmra.mrb[12].mxu0 %v1367_v30  ;;  %644 = vmatmul.mubr.bf16.gmra.mrb[12].mxu1 %v1368_v31 }
  0x47   : > { %587 = vmatprep.mubr.bf16.mxu0 %v1369_v32  ;;  %651 = vmatprep.mubr.bf16.mxu1 %v1371_v33 }
  0x4e   : > { %588 = vmatmul.mubr.bf16.gmra.mrb[16].mxu0 %v1373_v34  ;;  %652 = vmatmul.mubr.bf16.gmra.mrb[16].mxu1 %v1374_v35 }
  0x4f   : > { %595 = vmatprep.mubr.bf16.mxu0 %v1375_v36  ;;  %659 = vmatprep.mubr.bf16.mxu1 %v1377_v37 }
  0x56   : > { %596 = vmatmul.mubr.bf16.gmra.mrb[20].mxu0 %v1379_v38  ;;  %660 = vmatmul.mubr.bf16.gmra.mrb[20].mxu1 %v1380_v39 }
  0x57   : > { %603 = vmatprep.mubr.bf16.mxu0 %v1381_v40  ;;  %667 = vmatprep.mubr.bf16.mxu1 %v1383_v41 }
  0x5e   : > { %604 = vmatmul.mubr.bf16.gmra.mrb[24].mxu0 %v1385_v42  ;;  %668 = vmatmul.mubr.bf16.gmra.mrb[24].mxu1 %v1386_v43 }
  0x5f   : > { %611 = vmatprep.mubr.bf16.mxu0 %v1387_v44  ;;  %675 = vmatprep.mubr.bf16.mxu1 %v1389_v45 }
  0x66   : > { %612 = vmatmul.mubr.bf16.gmra.mrb[28].mxu0 %v1391_v46  ;;  %676 = vmatmul.mubr.bf16.gmra.mrb[28].mxu1 %v1392_v47 }
 0x101   : > { %v1176_v48 = vpop.f32.mrb[0].mxu0  ;;  %v1224_v49 = vpop.f32.mrb[0].mxu1 }
 0x102   : > { %v1177_v50 = vpop.f32.mrb[1].mxu0  ;;  %v1225_v52 = vpop.f32.mrb[1].mxu1 }
 0x103   : > { %v1178_v53 = vadd.f32 %v1177_v50, %v1176_v48  ;;  %v1226_v54 = vadd.f32 %v1225_v52, %v1224_v49  ;;  %v1179_v55 = vpop.f32.mrb[2].mxu0  ;;  %v1227_v56 = vpop.f32.mrb[2].mxu1 }
 0x104   : > { %v1180_v58 = vpop.f32.mrb[3].mxu0  ;;  %v1228_v59 = vpop.f32.mrb[3].mxu1 }
 0x105   : > { %v691_v60 = vmul.f32 %v1178_v53, %v1622_v51  ;;  %v707_v61 = vmul.f32 %v1226_v54, %v1622_v51  ;;  %v1181_v62 = vadd.f32 %v1180_v58, %v1179_v55  ;;  %v1229_v63 = vadd.f32 %v1228_v59, %v1227_v56 }
 0x107   : > { %v730_v0 = vadd.f32 %v1628_v57, %v691_v60  ;;  %v746_v1 = vadd.f32 %v1628_v57, %v707_v61  ;;  %v692_v2 = vmul.f32 %v1181_v62, %v1622_v51  ;;  %v708_v3 = vmul.f32 %v1229_v63, %v1622_v51 }
 0x109   : > { %v762_v4 = vmax.f32 %v730_v0, 0.0  ;;  %v778_v5 = vmax.f32 %v746_v1, 0.0  ;;  %v731_v6 = vadd.f32 %v1628_v57, %v692_v2  ;;  %v747_v7 = vadd.f32 %v1628_v57, %v708_v3  ;;  %v1182_v8 = vpop.f32.mrb[4].mxu0  ;;  %v1230_v9 = vpop.f32.mrb[4].mxu1 }
 0x10a   : > { %v1183_v10 = vpop.f32.mrb[5].mxu0  ;;  %v1231_v11 = vpop.f32.mrb[5].mxu1 }
 0x10b   : > { %v1127_v12 = vpack.c.bf16 %v762_v4, %v762_v4  ;;  %v1143_v13 = vpack.c.bf16 %v778_v5, %v778_v5  ;;  %v763_v14 = vmax.f32 %v731_v6, 0.0  ;;  %v779_v15 = vmax.f32 %v747_v7, 0.0  ;;  %v1185_v16 = vpop.f32.mrb[6].mxu0  ;;  %v1233_v17 = vpop.f32.mrb[6].mxu1 }
 0x10c   : > { %v1184_v18 = vadd.f32 %v1183_v10, %v1182_v8  ;;  %v1232_v19 = vadd.f32 %v1231_v11, %v1230_v9  ;;  %v1186_v20 = vpop.f32.mrb[7].mxu0  ;;  %v1234_v21 = vpop.f32.mrb[7].mxu1 }
 0x10d   : > { %923 = vst.msk [vmem:[%s1640_s10] sm:$0xf] %vm922_vm0, %v1127_v12  ;;  %939 = vst.msk [vmem:[%s1640_s10 + $0x40] sm:$0xf] %vm922_vm0, %v1143_v13  ;;  %v1128_v22 = vpack.c.bf16 %v763_v14, %v763_v14  ;;  %v1144_v23 = vpack.c.bf16 %v779_v15, %v779_v15  ;;  %v1187_v24 = vadd.f32 %v1186_v20, %v1185_v16 }
 0x10e   : > { %v1235_v25 = vadd.f32 %v1234_v21, %v1233_v17  ;;  %v693_v26 = vmul.f32 %v1184_v18, %v1622_v51  ;;  %v709_v27 = vmul.f32 %v1232_v19, %v1622_v51 }
 0x10f   : > { %924 = vst.msk [vmem:[%s1640_s10 + $0x4] sm:$0xf] %vm922_vm0, %v1128_v22  ;;  %940 = vst.msk [vmem:[%s1640_s10 + $0x44] sm:$0xf] %vm922_vm0, %v1144_v23  ;;  %v694_v28 = vmul.f32 %v1187_v24, %v1622_v51 }
 0x110   : > { %v710_v29 = vmul.f32 %v1235_v25, %v1622_v51  ;;  %v732_v30 = vadd.f32 %v1628_v57, %v693_v26  ;;  %v748_v31 = vadd.f32 %v1628_v57, %v709_v27 }
 0x111   : > { %v733_v32 = vadd.f32 %v1628_v57, %v694_v28  ;;  %v1188_v34 = vpop.f32.mrb[8].mxu0  ;;  %v1236_v35 = vpop.f32.mrb[8].mxu1 }
 0x112   : > { %v749_v33 = vadd.f32 %v1628_v57, %v710_v29  ;;  %v764_v36 = vmax.f32 %v732_v30, 0.0  ;;  %v780_v37 = vmax.f32 %v748_v31, 0.0  ;;  %v1189_v38 = vpop.f32.mrb[9].mxu0  ;;  %v1237_v39 = vpop.f32.mrb[9].mxu1 }
 0x113   : > { %v765_v40 = vmax.f32 %v733_v32, 0.0  ;;  %v1190_v42 = vadd.f32 %v1189_v38, %v1188_v34  ;;  %v1238_v43 = vadd.f32 %v1237_v39, %v1236_v35  ;;  %v1191_v44 = vpop.f32.mrb[10].mxu0  ;;  %v1239_v45 = vpop.f32.mrb[10].mxu1 }
 0x114   : > { %v781_v41 = vmax.f32 %v749_v33, 0.0  ;;  %v1129_v46 = vpack.c.bf16 %v764_v36, %v764_v36  ;;  %v1145_v47 = vpack.c.bf16 %v780_v37, %v780_v37  ;;  %v1192_v48 = vpop.f32.mrb[11].mxu0  ;;  %v1240_v49 = vpop.f32.mrb[11].mxu1 }
 0x115   : > { %v1130_v50 = vpack.c.bf16 %v765_v40, %v765_v40  ;;  %v695_v53 = vmul.f32 %v1190_v42, %v1622_v51  ;;  %v711_v54 = vmul.f32 %v1238_v43, %v1622_v51  ;;  %v1193_v55 = vadd.f32 %v1192_v48, %v1191_v44 }
 0x116   : > { %v1146_v52 = vpack.c.bf16 %v781_v41, %v781_v41  ;;  %925 = vst.msk [vmem:[%s1640_s10 + $0x8] sm:$0xf] %vm922_vm0, %v1129_v46  ;;  %941 = vst.msk [vmem:[%s1640_s10 + $0x48] sm:$0xf] %vm922_vm0, %v1145_v47  ;;  %v1241_v56 = vadd.f32 %v1240_v49, %v1239_v45 }
 0x117   : > { %926 = vst.msk [vmem:[%s1640_s10 + $0xc] sm:$0xf] %vm922_vm0, %v1130_v50  ;;  %v734_v58 = vadd.f32 %v1628_v57, %v695_v53  ;;  %v750_v59 = vadd.f32 %v1628_v57, %v711_v54  ;;  %v696_v60 = vmul.f32 %v1193_v55, %v1622_v51 }
 0x118   : > { %942 = vst.msk [vmem:[%s1640_s10 + $0x4c] sm:$0xf] %vm922_vm0, %v1146_v52  ;;  %v712_v61 = vmul.f32 %v1241_v56, %v1622_v51 }
 0x119   : > { %v766_v62 = vmax.f32 %v734_v58, 0.0  ;;  %v782_v63 = vmax.f32 %v750_v59, 0.0  ;;  %v1194_v0 = vpop.f32.mrb[12].mxu0  ;;  %v1242_v1 = vpop.f32.mrb[12].mxu1  ;;  %v735_v2 = vadd.f32 %v1628_v57, %v696_v60 }
 0x11a   : > { %v751_v3 = vadd.f32 %v1628_v57, %v712_v61  ;;  %v1195_v4 = vpop.f32.mrb[13].mxu0  ;;  %v1243_v5 = vpop.f32.mrb[13].mxu1 }
 0x11b   : > { %v1131_v6 = vpack.c.bf16 %v766_v62, %v766_v62  ;;  %v1147_v7 = vpack.c.bf16 %v782_v63, %v782_v63  ;;  %v1196_v8 = vadd.f32 %v1195_v4, %v1194_v0  ;;  %v1244_v9 = vadd.f32 %v1243_v5, %v1242_v1  ;;  %v1197_v10 = vpop.f32.mrb[14].mxu0  ;;  %v1245_v11 = vpop.f32.mrb[14].mxu1 }
 0x11c   : > { %v767_v12 = vmax.f32 %v735_v2, 0.0  ;;  %v783_v13 = vmax.f32 %v751_v3, 0.0  ;;  %v1198_v14 = vpop.f32.mrb[15].mxu0  ;;  %v1246_v15 = vpop.f32.mrb[15].mxu1 }
 0x11d   : > { %927 = vst.msk [vmem:[%s1640_s10 + $0x10] sm:$0xf] %vm922_vm0, %v1131_v6  ;;  %943 = vst.msk [vmem:[%s1640_s10 + $0x50] sm:$0xf] %vm922_vm0, %v1147_v7  ;;  %v697_v16 = vmul.f32 %v1196_v8, %v1622_v51  ;;  %v713_v17 = vmul.f32 %v1244_v9, %v1622_v51  ;;  %v1199_v18 = vadd.f32 %v1198_v14, %v1197_v10 }
 0x11e   : > { %v1247_v19 = vadd.f32 %v1246_v15, %v1245_v11  ;;  %v1132_v20 = vpack.c.bf16 %v767_v12, %v767_v12  ;;  %v1148_v21 = vpack.c.bf16 %v783_v13, %v783_v13 }
 0x11f   : > { %v736_v22 = vadd.f32 %v1628_v57, %v697_v16  ;;  %v752_v23 = vadd.f32 %v1628_v57, %v713_v17  ;;  %v698_v24 = vmul.f32 %v1199_v18, %v1622_v51 }
 0x120   : > { %v714_v25 = vmul.f32 %v1247_v19, %v1622_v51  ;;  %928 = vst.msk [vmem:[%s1640_s10 + $0x14] sm:$0xf] %vm922_vm0, %v1132_v20  ;;  %944 = vst.msk [vmem:[%s1640_s10 + $0x54] sm:$0xf] %vm922_vm0, %v1148_v21 }
 0x121   : > { %v768_v26 = vmax.f32 %v736_v22, 0.0  ;;  %v784_v27 = vmax.f32 %v752_v23, 0.0  ;;  %v737_v28 = vadd.f32 %v1628_v57, %v698_v24  ;;  %v1200_v30 = vpop.f32.mrb[16].mxu0  ;;  %v1248_v31 = vpop.f32.mrb[16].mxu1 }
 0x122   : > { %v753_v29 = vadd.f32 %v1628_v57, %v714_v25  ;;  %v1201_v32 = vpop.f32.mrb[17].mxu0  ;;  %v1249_v33 = vpop.f32.mrb[17].mxu1 }
 0x123   : > { %v1133_v34 = vpack.c.bf16 %v768_v26, %v768_v26  ;;  %v1149_v35 = vpack.c.bf16 %v784_v27, %v784_v27  ;;  %v769_v36 = vmax.f32 %v737_v28, 0.0  ;;  %v1203_v38 = vpop.f32.mrb[18].mxu0  ;;  %v1251_v39 = vpop.f32.mrb[18].mxu1  ;;  %v1202_v40 = vadd.f32 %v1201_v32, %v1200_v30 }
 0x124   : > { %v785_v37 = vmax.f32 %v753_v29, 0.0  ;;  %v1250_v41 = vadd.f32 %v1249_v33, %v1248_v31  ;;  %v1204_v42 = vpop.f32.mrb[19].mxu0  ;;  %v1252_v43 = vpop.f32.mrb[19].mxu1 }
 0x125   : > { %929 = vst.msk [vmem:[%s1640_s10 + $0x18] sm:$0xf] %vm922_vm0, %v1133_v34  ;;  %945 = vst.msk [vmem:[%s1640_s10 + $0x58] sm:$0xf] %vm922_vm0, %v1149_v35  ;;  %v1134_v44 = vpack.c.bf16 %v769_v36, %v769_v36  ;;  %v1205_v46 = vadd.f32 %v1204_v42, %v1203_v38  ;;  %v1253_v47 = vadd.f32 %v1252_v43, %v1251_v39 }
 0x126   : > { %v1150_v45 = vpack.c.bf16 %v785_v37, %v785_v37  ;;  %v699_v48 = vmul.f32 %v1202_v40, %v1622_v51  ;;  %v715_v49 = vmul.f32 %v1250_v41, %v1622_v51 }
 0x127   : > { %930 = vst.msk [vmem:[%s1640_s10 + $0x1c] sm:$0xf] %vm922_vm0, %v1134_v44  ;;  %v700_v50 = vmul.f32 %v1205_v46, %v1622_v51  ;;  %v716_v52 = vmul.f32 %v1253_v47, %v1622_v51 }
 0x128   : > { %946 = vst.msk [vmem:[%s1640_s10 + $0x5c] sm:$0xf] %vm922_vm0, %v1150_v45  ;;  %v738_v53 = vadd.f32 %v1628_v57, %v699_v48  ;;  %v754_v54 = vadd.f32 %v1628_v57, %v715_v49 }
 0x129   : > { %v739_v55 = vadd.f32 %v1628_v57, %v700_v50  ;;  %v755_v56 = vadd.f32 %v1628_v57, %v716_v52  ;;  %v1206_v58 = vpop.f32.mrb[20].mxu0  ;;  %v1254_v59 = vpop.f32.mrb[20].mxu1 }
 0x12a   : > { %v770_v60 = vmax.f32 %v738_v53, 0.0  ;;  %v786_v61 = vmax.f32 %v754_v54, 0.0  ;;  %v1207_v62 = vpop.f32.mrb[21].mxu0  ;;  %v1255_v63 = vpop.f32.mrb[21].mxu1 }
 0x12b   : > { %v771_v0 = vmax.f32 %v739_v55, 0.0  ;;  %v787_v1 = vmax.f32 %v755_v56, 0.0  ;;  %v1208_v2 = vadd.f32 %v1207_v62, %v1206_v58  ;;  %v1256_v3 = vadd.f32 %v1255_v63, %v1254_v59  ;;  %v1209_v4 = vpop.f32.mrb[22].mxu0  ;;  %v1257_v5 = vpop.f32.mrb[22].mxu1 }
 0x12c   : > { %v1135_v6 = vpack.c.bf16 %v770_v60, %v770_v60  ;;  %v1151_v7 = vpack.c.bf16 %v786_v61, %v786_v61  ;;  %v1210_v8 = vpop.f32.mrb[23].mxu0  ;;  %v1258_v9 = vpop.f32.mrb[23].mxu1 }
 0x12d   : > { %v1136_v10 = vpack.c.bf16 %v771_v0, %v771_v0  ;;  %v1152_v11 = vpack.c.bf16 %v787_v1, %v787_v1  ;;  %v701_v12 = vmul.f32 %v1208_v2, %v1622_v51  ;;  %v717_v13 = vmul.f32 %v1256_v3, %v1622_v51 }
 0x12e   : > { %931 = vst.msk [vmem:[%s1640_s10 + $0x20] sm:$0xf] %vm922_vm0, %v1135_v6  ;;  %947 = vst.msk [vmem:[%s1640_s10 + $0x60] sm:$0xf] %vm922_vm0, %v1151_v7  ;;  %v1211_v14 = vadd.f32 %v1210_v8, %v1209_v4  ;;  %v1259_v15 = vadd.f32 %v1258_v9, %v1257_v5 }
 0x12f   : > { %932 = vst.msk [vmem:[%s1640_s10 + $0x24] sm:$0xf] %vm922_vm0, %v1136_v10  ;;  %948 = vst.msk [vmem:[%s1640_s10 + $0x64] sm:$0xf] %vm922_vm0, %v1152_v11  ;;  %v740_v16 = vadd.f32 %v1628_v57, %v701_v12  ;;  %v756_v17 = vadd.f32 %v1628_v57, %v717_v13 }
 0x130   : > { %v702_v18 = vmul.f32 %v1211_v14, %v1622_v51  ;;  %v718_v19 = vmul.f32 %v1259_v15, %v1622_v51 }
 0x131   : > { %v772_v20 = vmax.f32 %v740_v16, 0.0  ;;  %v788_v21 = vmax.f32 %v756_v17, 0.0  ;;  %v1212_v22 = vpop.f32.mrb[24].mxu0  ;;  %v1260_v23 = vpop.f32.mrb[24].mxu1 }
 0x132   : > { %v741_v24 = vadd.f32 %v1628_v57, %v702_v18  ;;  %v757_v25 = vadd.f32 %v1628_v57, %v718_v19  ;;  %v1213_v26 = vpop.f32.mrb[25].mxu0  ;;  %v1261_v27 = vpop.f32.mrb[25].mxu1 }
 0x133   : > { %v1137_v28 = vpack.c.bf16 %v772_v20, %v772_v20  ;;  %v1153_v29 = vpack.c.bf16 %v788_v21, %v788_v21  ;;  %v1214_v30 = vadd.f32 %v1213_v26, %v1212_v22  ;;  %v1262_v31 = vadd.f32 %v1261_v27, %v1260_v23  ;;  %v1215_v32 = vpop.f32.mrb[26].mxu0  ;;  %v1263_v33 = vpop.f32.mrb[26].mxu1 }
 0x134   : > { %v773_v34 = vmax.f32 %v741_v24, 0.0  ;;  %v789_v35 = vmax.f32 %v757_v25, 0.0  ;;  %v1216_v36 = vpop.f32.mrb[27].mxu0  ;;  %v1264_v37 = vpop.f32.mrb[27].mxu1 }
 0x135   : > { %933 = vst.msk [vmem:[%s1640_s10 + $0x28] sm:$0xf] %vm922_vm0, %v1137_v28  ;;  %949 = vst.msk [vmem:[%s1640_s10 + $0x68] sm:$0xf] %vm922_vm0, %v1153_v29  ;;  %v703_v38 = vmul.f32 %v1214_v30, %v1622_v51  ;;  %v719_v39 = vmul.f32 %v1262_v31, %v1622_v51  ;;  %v1217_v40 = vadd.f32 %v1216_v36, %v1215_v32 }
 0x136   : > { %v1265_v41 = vadd.f32 %v1264_v37, %v1263_v33  ;;  %v1138_v42 = vpack.c.bf16 %v773_v34, %v773_v34  ;;  %v1154_v43 = vpack.c.bf16 %v789_v35, %v789_v35 }
 0x137   : > { %v742_v44 = vadd.f32 %v1628_v57, %v703_v38  ;;  %v758_v45 = vadd.f32 %v1628_v57, %v719_v39  ;;  %v704_v46 = vmul.f32 %v1217_v40, %v1622_v51 }
 0x138   : > { %v720_v47 = vmul.f32 %v1265_v41, %v1622_v51  ;;  %934 = vst.msk [vmem:[%s1640_s10 + $0x2c] sm:$0xf] %vm922_vm0, %v1138_v42  ;;  %950 = vst.msk [vmem:[%s1640_s10 + $0x6c] sm:$0xf] %vm922_vm0, %v1154_v43 }
 0x139   : > { %v774_v48 = vmax.f32 %v742_v44, 0.0  ;;  %v790_v49 = vmax.f32 %v758_v45, 0.0  ;;  %v743_v50 = vadd.f32 %v1628_v57, %v704_v46  ;;  %v1218_v53 = vpop.f32.mrb[28].mxu0  ;;  %v1266_v54 = vpop.f32.mrb[28].mxu1 }
 0x13a   : > { %v759_v52 = vadd.f32 %v1628_v57, %v720_v47  ;;  %v1219_v55 = vpop.f32.mrb[29].mxu0  ;;  %v1267_v56 = vpop.f32.mrb[29].mxu1 }
 0x13b   : > { %v1139_v58 = vpack.c.bf16 %v774_v48, %v774_v48  ;;  %v1155_v59 = vpack.c.bf16 %v790_v49, %v790_v49  ;;  %v775_v60 = vmax.f32 %v743_v50, 0.0  ;;  %v1221_v62 = vpop.f32.mrb[30].mxu0  ;;  %v1269_v63 = vpop.f32.mrb[30].mxu1  ;;  %v1220_v0 = vadd.f32 %v1219_v55, %v1218_v53 }
 0x13c   : > { %v791_v61 = vmax.f32 %v759_v52, 0.0  ;;  %v1268_v1 = vadd.f32 %v1267_v56, %v1266_v54  ;;  %v1222_v2 = vpop.f32.mrb[31].mxu0  ;;  %v1270_v3 = vpop.f32.mrb[31].mxu1 }
 0x13d   : > { %935 = vst.msk [vmem:[%s1640_s10 + $0x30] sm:$0xf] %vm922_vm0, %v1139_v58  ;;  %951 = vst.msk [vmem:[%s1640_s10 + $0x70] sm:$0xf] %vm922_vm0, %v1155_v59  ;;  %v1140_v4 = vpack.c.bf16 %v775_v60, %v775_v60  ;;  %v1223_v6 = vadd.f32 %v1222_v2, %v1221_v62  ;;  %v1271_v7 = vadd.f32 %v1270_v3, %v1269_v63 }
 0x13e   : > { %v1156_v5 = vpack.c.bf16 %v791_v61, %v791_v61  ;;  %v705_v8 = vmul.f32 %v1220_v0, %v1622_v51  ;;  %v721_v9 = vmul.f32 %v1268_v1, %v1622_v51 }
 0x13f   : > { %936 = vst.msk [vmem:[%s1640_s10 + $0x34] sm:$0xf] %vm922_vm0, %v1140_v4  ;;  %v706_v10 = vmul.f32 %v1223_v6, %v1622_v51  ;;  %v722_v11 = vmul.f32 %v1271_v7, %v1622_v51 }
 0x140   : > { %952 = vst.msk [vmem:[%s1640_s10 + $0x74] sm:$0xf] %vm922_vm0, %v1156_v5  ;;  %v744_v12 = vadd.f32 %v1628_v57, %v705_v8  ;;  %v760_v13 = vadd.f32 %v1628_v57, %v721_v9 }
 0x141   : > { %v745_v14 = vadd.f32 %v1628_v57, %v706_v10  ;;  %v761_v15 = vadd.f32 %v1628_v57, %v722_v11 }
 0x142   : > { %v776_v16 = vmax.f32 %v744_v12, 0.0  ;;  %v792_v17 = vmax.f32 %v760_v13, 0.0 }
 0x143   : > { %v777_v18 = vmax.f32 %v745_v14, 0.0  ;;  %v793_v51 = vmax.f32 %v761_v15, 0.0 }
 0x144   : > { %v1141_v19 = vpack.c.bf16 %v776_v16, %v776_v16  ;;  %v1157_v20 = vpack.c.bf16 %v792_v17, %v792_v17 }
 0x145   : > { %v1142_v57 = vpack.c.bf16 %v777_v18, %v777_v18  ;;  %v1158_v21 = vpack.c.bf16 %v793_v51, %v793_v51 }
 0x146   : > { %937 = vst.msk [vmem:[%s1640_s10 + $0x38] sm:$0xf] %vm922_vm0, %v1141_v19  ;;  %953 = vst.msk [vmem:[%s1640_s10 + $0x78] sm:$0xf] %vm922_vm0, %v1157_v20 }
 0x147   : > { %938 = vst.msk [vmem:[%s1640_s10 + $0x3c] sm:$0xf] %vm922_vm0, %v1142_v57  ;;  %954 = vst.msk [vmem:[%s1640_s10 + $0x7c] sm:$0xf] %vm922_vm0, %v1158_v21 }
 0x148   : > { %1406 = shalt.err (!%p1403_p3)
}
 0x149   : > { %s1407_s30 = scalar_lea.hbm %s1759_s20, 2048  ;;  %s1411_s8 = scalar_lea.hbm %s1818_s4, 4096 }
 0x14a   : > { %p1408_p4 = scmp.ne.s32.totalorder %s1759_s20, %s1407_s30  ;;  %p1412_p9 = scmp.lt.u32.totalorder %s1759_s20, %s1818_s4 }
 0x14b   : > { %p1413_p10 = scmp.lt.u32.totalorder %s1411_s8, %s1407_s30  ;;  %p1415_p12 = scmp.lt.u32.totalorder %s1407_s30, %s1759_s20 }
 0x14c   : > { %p1409_p7 = pnand %p1408_p4, %p1523_p5 }
 0x14d   : > { %p1414_p11 = por %p1413_p10, %p1412_p9 }
 0x14e   : > { %p1410_p8 = pneg %p1409_p7 }
 0x14f   : > { %p1416_p13 = por %p1415_p12, %p1414_p11 }
 0x151   : > { %p1417_p0 = pnand %p1416_p13, %p1410_p8 }
 0x153   : > { %1420 = shalt.err (!%p1417_p0)
}
 0x154   : > { %s1458_s7 = smov 64   ;;  %s1459_s10 = smov 4  }
 0x155   : > { %1288 = dma.vmem_to_hbm [thread:$0]  (%p1523_p5), %s1761_s12, 2048, %s1759_s20, %s1773_s19, %s1458_s7, %s1458_s7, %s1459_s10  }
 0x156 PF: > { %p1294_p1 = scmp.ge.s32.totalorder %s1455_s18, 2  ;;  %s984_s11 = sand.u32 1, %s1443_s15  }
 0x157   : > { %s985_s13 = scalar_lea.sflag [#allocation3], %s984_s11 }
 0x158   : > { %p1291_p2 = pnand %p1294_p1, %p1527_p6 }
 0x15a   : > { %1438 = dma.done.wait (!%p1291_p2), %s985_s13, 2048  }
 0x15b   : > { %1440 = vsyncadd (!%p1291_p2), %s985_s13, 4294965248  ;;  %p14_p3 = scmp.ge.s32.totalorder %s1510_s21, 4   ;;  %s1821_s15 = smov %s1447_s16 }
 0x15c   : > { %s1822_s16 = smov %s1451_s17  ;;  %s1823_s17 = smov %s1521_s24 }
 0x15d   : > { %s1824_s18 = smov %s1510_s21  ;;  %16 = sbr.rel (!%p14_p3) target bundleno = 3 (0x3), region = 71 }
 0x164   :  { %990 = vsyncpa [#allocation3], 1 }
 0x165   :  { %992 = vsyncpa [#allocation3 + $0x1], 1 }

</bundles_post_ra>
